<compile_context>
chip_gen: v7x
topology: tpu7x:2x2x1
jax: 0.10.0
libtpu: 0.0.40
codegen_flags: <defaults>
</compile_context>

<pallas_src>
import jax
import jax.numpy as jnp
from jax.experimental import pallas as pl
from jax.experimental.pallas import tpu as pltpu


# Scoped-VMEM limit requested from Mosaic and the (smaller) budget tiles are
# sized against.  32 MiB is safe on all generations (v5e/v6e 128 MiB physical,
# v7x 64 MiB physical / 32 MiB scoped default); the 4 MiB delta is headroom
# for Pallas-internal scratch and semaphores.
_VMEM_LIMIT_BYTES = 32 * 1024 * 1024
_VMEM_BUDGET_BYTES = 28 * 1024 * 1024


def _sublane_multiple(dtype) -> int:
    """Second-minor tile multiple per dtype: 8 (f32), 16 (bf16), 32 (int8)."""
    itemsize = jnp.dtype(dtype).itemsize
    return max(8, 32 // itemsize)


def _round_up(x: int, m: int) -> int:
    return ((x + m - 1) // m) * m


def _choose_tile_rows(n_rows: int, d: int, dtype) -> int:
    """Largest row tile that keeps double-buffered blocks inside the budget."""
    sub = _sublane_multiple(dtype)
    itemsize = jnp.dtype(dtype).itemsize
    d_pad = _round_up(d, 128)  # lanes pad to 128 in VMEM
    # Live VMEM per row: one input block (2*d_pad) + two output blocks (d_pad
    # each), all double-buffered => 8 * d_pad * itemsize bytes.
    bytes_per_row = 8 * d_pad * itemsize
    cap = max(sub, _VMEM_BUDGET_BYTES // bytes_per_row)
    cap = min(cap, 1024)  # 512-1024 sublanes already reaches ~85% HBM roofline
    cap = max(sub, (cap // sub) * sub)

    if n_rows < 2 * sub:
        # Too small to split; a single full-extent block is exempt from the
        # (8,128) divisibility rule.
        return n_rows

    if n_rows <= cap:
        # Never collapse to a single grid step: >=2 steps shards across both
        # v7x TensorCores and overlaps writeback of tile i-1 with fetch of i.
        tr = _round_up(-(-n_rows // 2), sub)
        return min(tr, n_rows)

    # Prefer a large divisor of n_rows (no ragged tail), but never fall far
    # below cap: one masked tail tile beats hundreds of tiny grid steps each
    # paying ~0.35us pipeline overhead.
    lo = max(cap // 2, 256, sub)
    for tr in range(cap, lo - 1, -sub):
        if n_rows % tr == 0:
            return tr
    return cap  # ragged tail is handled (masked) by Pallas


def _splitting_kernel(x_ref, even_ref, odd_ref):
    # x_ref block is (tr, 2*D): [even features | odd features] per row.
    # Static lane slices: whole-vreg selects when D % 128 == 0.
    d = even_ref.shape[-1]
    even_ref[...] = x_ref[:, :d]
    odd_ref[...] = x_ref[:, d:]


def splitting(x, *, tile_rows=None, force_pallas=False):
    """Pallas equivalent of Splitting.forward: returns (even, odd)."""
    B, T, D = x.shape

    if T % 2 != 0:
        # TODO(synk): odd sequence lengths take the plain XLA strided-slice path.
        return x[:, ::2, :], x[:, 1::2, :]

    if D < 128 and not force_pallas:
        # Lane-sparse outputs (D < 128 => masked partial stores, sub-512B DMA
        # chunks); a plain XLA strided slice is already at HBM roofline.
        return x[:, ::2, :], x[:, 1::2, :]

    half = T // 2
    n_rows = B * half

    # Free metadata reshape on contiguous memory: row n packs the features of
    # time-steps (2n, 2n+1) back-to-back along the lane axis.
    x2 = x.reshape(n_rows, 2 * D)

    sub = _sublane_multiple(x.dtype)
    if tile_rows is None:
        tr = _choose_tile_rows(n_rows, D, x.dtype)
    else:
        tr = int(tile_rows)
        if tr != n_rows and (tr <= 0 or tr % sub != 0 or tr > n_rows):
            raise ValueError(
                f"tile_rows={tr} must equal n_rows={n_rows} or be a positive "
                f"multiple of the dtype sublane tile ({sub}) and <= n_rows")

    grid = (pl.cdiv(n_rows, tr),)

    grid_spec = pltpu.PrefetchScalarGridSpec(
        num_scalar_prefetch=0,
        grid=grid,
        in_specs=[
            # One fully contiguous (tr, 2*D) block per step; last dim equals
            # the full array dim so it is exempt from the 128-divisibility rule.
            pl.BlockSpec((tr, 2 * D), lambda i: (i, 0)),
        ],
        out_specs=[
            pl.BlockSpec((tr, D), lambda i: (i, 0)),
            pl.BlockSpec((tr, D), lambda i: (i, 0)),
        ],
    )

    even, odd = pl.pallas_call(
        _splitting_kernel,
        out_shape=(
            jax.ShapeDtypeStruct((n_rows, D), x.dtype),
            jax.ShapeDtypeStruct((n_rows, D), x.dtype),
        ),
        grid_spec=grid_spec,
        compiler_params=pltpu.CompilerParams(
            dimension_semantics=("parallel",),
            vmem_limit_bytes=_VMEM_LIMIT_BYTES,
        ),
    )(x2)

    return even.reshape(B, half, D), odd.reshape(B, half, D)


if __name__ == "__main__":
    key = jax.random.PRNGKey(0)
    k0, k1, k2, k3 = jax.random.split(key, 4)

    def check(x, tile_rows=None, force_pallas=False):
        even, odd = splitting(x, tile_rows=tile_rows, force_pallas=force_pallas)
        even = jax.block_until_ready(even)
        odd = jax.block_until_ready(odd)
        ref_even = x[:, ::2, :]
        ref_odd = x[:, 1::2, :]
        assert even.shape == ref_even.shape and odd.shape == ref_odd.shape
        assert jnp.array_equal(even, ref_even), "even part mismatch"
        assert jnp.array_equal(odd, ref_odd), "odd part mismatch"

    # Small base shape consistent with (batch, seq, hidden); force the Pallas
    # path even though D < 128 (default would dispatch to the XLA slice).
    check(jax.random.normal(k0, (2, 8, 32), dtype=jnp.float32), force_pallas=True)
    # Default dispatch (XLA strided-slice fast path for lane-sparse D).
    check(jax.random.normal(k0, (2, 8, 32), dtype=jnp.float32))
    # Lane-dense path: D % 128 == 0, bf16 sublane packing.
    check(jax.random.normal(k1, (2, 16, 128), dtype=jnp.bfloat16))
    # Multi-tile (pipelined) path with a divisor tile.
    check(jax.random.normal(k2, (2, 40, 32), dtype=jnp.float32),
          tile_rows=8, force_pallas=True)
    # Masked ragged-tail tile (n_rows=40, tr=16 -> 3 steps, last is partial).
    check(jax.random.normal(k2, (2, 40, 32), dtype=jnp.float32),
          tile_rows=16, force_pallas=True)
    # Auto-tiling with >=2 grid steps for a shape that fits a single tile.
    check(jax.random.normal(k3, (2, 64, 256), dtype=jnp.float32))

    print("KERNEL_OK")
</pallas_src>

<mosaic_0001>
module attributes {stable_mosaic.version = 11 : i64} {
  func.func @_splitting_kernel(%arg0: i32, %arg1: memref<8x64xf32, #tpu.memory_space<vmem>>, %arg2: memref<8x32xf32, #tpu.memory_space<vmem>>, %arg3: memref<8x32xf32, #tpu.memory_space<vmem>>) attributes {dimension_semantics = [#tpu.dimension_semantics<parallel>], iteration_bounds = array<i64: 1>, scalar_prefetch = 0 : i64, scratch_operands = 0 : i64, tpu.core_type = #tpu.core_type<tc>, window_params = [{transform_indices = @transform_0, window_bounds = array<i64: 8, 64>}, {transform_indices = @transform_1, window_bounds = array<i64: 8, 32>}, {transform_indices = @transform_2, window_bounds = array<i64: 8, 32>}]} {
    %c0 = arith.constant 0 : index
    %c0_0 = arith.constant 0 : index
    %0 = vector.load %arg1[%c0, %c0_0] : memref<8x64xf32, #tpu.memory_space<vmem>>, vector<8x32xf32>
    %c0_1 = arith.constant 0 : index
    %c0_2 = arith.constant 0 : index
    %1 = vector.load %arg2[%c0_1, %c0_2] : memref<8x32xf32, #tpu.memory_space<vmem>>, vector<8x32xf32>
    tpu.vector_store %arg2[%c0_1, %c0_2], %0 {strides = array<i32>} : memref<8x32xf32, #tpu.memory_space<vmem>>, vector<8x32xf32>,
    %c0_3 = arith.constant 0 : index
    %c32 = arith.constant 32 : index
    %2 = vector.load %arg1[%c0_3, %c32] : memref<8x64xf32, #tpu.memory_space<vmem>>, vector<8x32xf32>
    %c0_4 = arith.constant 0 : index
    %c0_5 = arith.constant 0 : index
    %3 = vector.load %arg3[%c0_4, %c0_5] : memref<8x32xf32, #tpu.memory_space<vmem>>, vector<8x32xf32>
    tpu.vector_store %arg3[%c0_4, %c0_5], %2 {strides = array<i32>} : memref<8x32xf32, #tpu.memory_space<vmem>>, vector<8x32xf32>,
    return
  }
  func.func @transform_0(%arg0: i32) -> (i32, i32) {
    %c0_i32 = arith.constant 0 : i32
    %c0_i32_0 = arith.constant 0 : i32
    return %arg0, %c0_i32 : i32, i32
  }
  func.func @transform_1(%arg0: i32) -> (i32, i32) {
    %c0_i32 = arith.constant 0 : i32
    %c0_i32_0 = arith.constant 0 : i32
    return %arg0, %c0_i32 : i32, i32
  }
  func.func @transform_2(%arg0: i32) -> (i32, i32) {
    %c0_i32 = arith.constant 0 : i32
    %c0_i32_0 = arith.constant 0 : i32
    return %arg0, %c0_i32 : i32, i32
  }
}

</mosaic_0001>

<bundles_post_ra>
// kernel: tpu_custom_call.1
= control target key start
LH: loop header
LB: loop body
LE: loop exit
PB: predicated region body
PF: predicated region fallthrough
CT: control target
= control target key end

     0   :  { %8 = vsyncpa [#allocation3], 0  ;;  %s195_s0 = inlined_call_operand.hbm [shape: f32[8,64], index: 0, kind: input, shape index: {}]   ;;  %s196_s1 = inlined_call_operand.hbm [shape: f32[8,32], index: 1, kind: output, shape index: {0}]   ;;  %s197_s2 = inlined_call_operand.hbm [shape: f32[8,32], index: 2, kind: output, shape index: {1}]  }
   0x1   :  { %9 = vsyncpa [#allocation4], 0 }
   0x2   :  { %10 = vsyncpa [#allocation7], 0  ;;  %s138_s9 = smov [#allocation2]   ;;  %s66_s13 = scalar_lea.hbm %s195_s0, 128 }
   0x3   :  { %s17_s10 = sshll.u32 %s138_s9, 4  ;;  %p67_p0 = scmp.ne.s32.totalorder %s195_s0, %s66_s13  ;;  %s18_s10 = int_to_ptr.vmem [resolvable:$true] %s17_s10 }
   0x4   :  { %p70_p1 = scmp.lt.u32.totalorder %s66_s13, %s195_s0 }
   0x6   :  { %p72_p2 = pnand %p70_p1, %p67_p0 }
   0x8   :  { %75 = shalt.err (!%p72_p2)
}
   0x9   :  { %s76_s18 = scalar_lea.vmem %s18_s10, 128  ;;  %p81_p4 = scmp.lt.s32.totalorder %s18_s10, %s18_s10 }
   0xa   :  { %p77_p3 = scmp.ne.s32.totalorder %s18_s10, %s76_s18  ;;  %p82_p5 = scmp.lt.s32.totalorder %s76_s18, %s76_s18 }
   0xc   :  { %p83_p6 = por %p82_p5, %p81_p4 }
   0xe   :  { %p84_p7 = pnand %p83_p6, %p77_p3 }
  0x10   :  { %87 = shalt.err (!%p84_p7)
}
  0x11   :  { %20 = dma.hbm_to_vmem [thread:$0]  %s195_s0, 128, %s18_s10, [#allocation3]  }
  0x12   :  { %132 = dma.done.wait [#allocation3], 128  }
  0x13   :  { %133 = vsyncadd [#allocation3], 4294967168  ;;  %s139_s21 = smov [#allocation5]   ;;  %vm25_vm0 = vcmask 261120   ;;  %v27_v0 = vld [vmem:[#allocation2] sm:$0xff]  ;;  %s140_s23 = smov 96  }
  0x14   :  { %s39_s22 = sshll.u32 %s139_s21, 4  ;;  %29 = vrot.lane.b32.xlu0 %v27_v0, %s140_s23  ;;  %26 = vst.msk [vmem:[#allocation5] sm:$0xff] %vm25_vm0, %v27_v0  ;;  %s40_s22 = int_to_ptr.vmem [resolvable:$true] %s39_s22 }
  0x15   :  { %s88_s24 = scalar_lea.vmem %s40_s22, 128  ;;  %p93_p9 = scmp.lt.s32.totalorder %s40_s22, %s40_s22 }
  0x16   :  { %p89_p8 = scmp.ne.s32.totalorder %s40_s22, %s88_s24  ;;  %p94_p10 = scmp.lt.s32.totalorder %s88_s24, %s88_s24 }
  0x18   :  { %p95_p11 = por %p94_p10, %p93_p9 }
  0x1a   :  { %p96_p12 = pnand %p95_p11, %p89_p8 }
  0x1c   :  { %99 = shalt.err (!%p96_p12)
}
  0x1d   :  { %s100_s26 = scalar_lea.hbm %s196_s1, 128 }
  0x1e   :  { %p101_p13 = scmp.ne.s32.totalorder %s196_s1, %s100_s26  ;;  %p104_p0 = scmp.lt.u32.totalorder %s100_s26, %s196_s1 }
  0x20   :  { %p106_p1 = pnand %p104_p0, %p101_p13 }
  0x22   :  { %109 = shalt.err (!%p106_p1)
}
  0x23   :  { %42 = dma.vmem_to_hbm [thread:$0]  %s40_s22, 128, %s196_s1, [#allocation4]  }
  0x24   :  { %s141_s5 = smov [#allocation6]  }
  0x25   :  { %s49_s6 = sshll.u32 %s141_s5, 4  ;;  %s50_s6 = int_to_ptr.vmem [resolvable:$true] %s49_s6 }
  0x26   :  { %s110_s7 = scalar_lea.vmem %s50_s6, 128  ;;  %p115_p3 = scmp.lt.s32.totalorder %s50_s6, %s50_s6 }
  0x27   :  { %p111_p2 = scmp.ne.s32.totalorder %s50_s6, %s110_s7  ;;  %p116_p4 = scmp.lt.s32.totalorder %s110_s7, %s110_s7 }
  0x29   :  { %p117_p5 = por %p116_p4, %p115_p3 }
  0x2b   :  { %p118_p6 = pnand %p117_p5, %p111_p2 }
  0x86   :  { %v30_v1 = vpop.permute.xlu0 %29 }
  0x87   :  { %32 = vst.msk [vmem:[#allocation6] sm:$0xff] %vm25_vm0, %v30_v1 }
  0x88   :  { %121 = shalt.err (!%p118_p6)
}
  0x89   :  { %s122_s10 = scalar_lea.hbm %s197_s2, 128 }
  0x8a   :  { %p123_p7 = scmp.ne.s32.totalorder %s197_s2, %s122_s10  ;;  %p126_p8 = scmp.lt.u32.totalorder %s122_s10, %s197_s2 }
  0x8c   :  { %p128_p9 = pnand %p126_p8, %p123_p7 }
  0x8e   :  { %131 = shalt.err (!%p128_p9)
}
  0x8f   :  { %52 = dma.vmem_to_hbm [thread:$0]  %s50_s6, 128, %s197_s2, [#allocation7]  }
  0x90   :  { %134 = dma.done.wait [#allocation4], 128  }
  0x91   :  { %135 = vsyncadd [#allocation4], 4294967168 }
  0x92   :  { %136 = dma.done.wait [#allocation7], 128  }
  0x93   :  { %137 = vsyncadd [#allocation7], 4294967168 }
  0x94   :  { %59 = vsyncpa [#allocation3], 1 }
  0x95   :  { %60 = vsyncpa [#allocation4], 1 }
  0x96   :  { %61 = vsyncpa [#allocation7], 1 }

</bundles_post_ra>
